<compile_context>
chip_gen: v5e
topology: v5e:2x2
jax: 0.10.0
libtpu: 0.0.40
codegen_flags: <defaults>
</compile_context>

<pallas_src>
import math

import jax
import jax.numpy as jnp
from jax.experimental import pallas as pl
from jax.experimental.pallas import tpu as pltpu


def build_positional_encoding(d_model: int, max_len: int = 5000,
                              dtype=jnp.float32) -> jnp.ndarray:
    """Deterministic sin/cos table, identical math to the PyTorch __init__.

    Returned as a dense 2-D (max_len, d_model) table (the PyTorch buffer's
    singleton batch dim is dropped; the kernel broadcasts over batch)."""
    assert d_model % 2 == 0, "PositionalEncoding requires an even d_model"
    position = jnp.arange(0, max_len, dtype=jnp.float32)[:, None]           # (max_len, 1)
    div_term = jnp.exp(
        jnp.arange(0, d_model, 2, dtype=jnp.float32) * (-math.log(10000.0) / d_model)
    )                                                                         # (d_model/2,)
    pe = jnp.zeros((max_len, d_model), dtype=jnp.float32)
    pe = pe.at[:, 0::2].set(jnp.sin(position * div_term))
    pe = pe.at[:, 1::2].set(jnp.cos(position * div_term))
    return pe.astype(dtype)                                                   # (max_len, d_model)


# ---------------------------------------------------------------------------
# Kernels
# ---------------------------------------------------------------------------

def _pe_add_kernel_batched(x_ref, pe_ref, o_ref):
    # x_ref / o_ref: (block_s, block_b, D); pe_ref: (block_s, D)
    # Sublane broadcast of each pe row over the batch dim.
    o_ref[...] = x_ref[...] + pe_ref[...][:, None, :]


def _pe_add_kernel_dense(x_ref, pe_ref, o_ref):
    # x_ref / o_ref / pe_ref: (block_s, D) — the batch grid dim is squeezed.
    o_ref[...] = x_ref[...] + pe_ref[...]


# ---------------------------------------------------------------------------
# Tiling helpers
# ---------------------------------------------------------------------------

def _sublane_pack(dtype) -> int:
    """Sublanes per 32-bit packing unit: 8 for f32, 16 for bf16, 32 for int8/fp8."""
    return max(8, 32 // jnp.dtype(dtype).itemsize)


def _round_up(x: int, m: int) -> int:
    return -(-x // m) * m


def _largest_divisor_leq(n: int, cap: int, multiple_of: int = 1) -> int:
    """Largest divisor of n that is <= cap and (a multiple of `multiple_of` or
    equal to n).  Falls back to the smallest legal divisor if none fit."""
    cap = min(n, max(1, cap))
    legal = [d for d in range(1, n + 1)
             if n % d == 0 and (d % multiple_of == 0 or d == n)]
    fits = [d for d in legal if d <= cap]
    return max(fits) if fits else min(legal)


def _choose_block_s(seq_len: int, padded_row_bytes: int, useful_row_bytes: int, *,
                    vmem_budget_bytes: int, min_tile_bytes: int,
                    multiple_of: int = 1) -> int:
    """Largest seq tile under the (double-buffered) VMEM budget.  No forced
    step count: a problem that already fits is only split in two if each half
    still moves >= min_tile_bytes of useful x+out traffic."""
    rows_by_vmem = max(1, vmem_budget_bytes // (2 * padded_row_bytes))
    cap = min(seq_len, rows_by_vmem)
    if cap == seq_len and seq_len > 1 and (seq_len // 2) * useful_row_bytes >= min_tile_bytes:
        cap = seq_len // 2          # >=2 pipeline steps when it is essentially free
    return _largest_divisor_leq(seq_len, cap, multiple_of=multiple_of)


# ---------------------------------------------------------------------------
# Forward
# ---------------------------------------------------------------------------

def positional_encoding_forward(x: jnp.ndarray, pe: jnp.ndarray, *,
                                vmem_budget_bytes: int = 14 << 20,
                                min_tile_bytes: int = 512 << 10,
                                donate_x: bool = False) -> jnp.ndarray:
    """x: (S, B, D); pe: (max_len, D) (a PyTorch-style (max_len, 1, D) buffer is
    also accepted and squeezed).  Returns x + pe[:S] broadcast over batch."""
    S, B, D = x.shape
    if pe.ndim == 3:                       # tolerate the (max_len, 1, D) buffer
        pe = pe.reshape(pe.shape[0], pe.shape[-1])
    max_len, d_pe = pe.shape
    assert d_pe == D, f"pe shape {pe.shape} incompatible with x {x.shape}"
    assert S <= max_len, "sequence longer than the positional table"
    if pe.dtype != x.dtype:
        # Fallback only: callers should build pe in the activation dtype so this
        # max_len x D cast never sits on the steady-state path.
        pe = pe.astype(x.dtype)

    itemsize = jnp.dtype(x.dtype).itemsize
    pack = _sublane_pack(x.dtype)
    d_pad = _round_up(D, 128)

    dense_minor = (B % pack == 0) and (D % 128 == 0)

    if dense_minor:
        # --- Path A: x/out minor dims (B, D) are already sublane/lane dense. ---
        useful_row = 2 * B * D * itemsize                       # x + out per seq row
        padded_row = (2 * _round_up(B, pack) + 1) * d_pad * itemsize   # + pe row
        block_s = _choose_block_s(S, padded_row, useful_row,
                                  vmem_budget_bytes=vmem_budget_bytes,
                                  min_tile_bytes=min_tile_bytes)
        n_seq = S // block_s
        b_blk, n_batch = B, 1
        # v7x: if the seq grid has a single step, split batch so both TCs work.
        if n_seq < 2 and B >= 2 * pack and (B // 2) % pack == 0:
            b_blk, n_batch = B // 2, 2
        grid = (n_seq, n_batch)
        footprint = 2 * block_s * (2 * _round_up(b_blk, pack) + 1) * d_pad * itemsize
        kernel = _pe_add_kernel_batched
        in_specs = [
            pl.BlockSpec((block_s, b_blk, D), lambda i, j: (i, j, 0)),
            pl.BlockSpec((block_s, D), lambda i, j: (i, 0)),       # pe ignores batch
        ]
        out_specs = pl.BlockSpec((block_s, b_blk, D), lambda i, j: (i, j, 0))
        call_args = (x, pe)
        out_shape = jax.ShapeDtypeStruct((S, B, D), x.dtype)
        post = lambda y: y
    else:
        # --- Path B: small batch / ragged D.  Make (seq, d_model) the minor ---
        # dims so vregs/DMA are dense and stores are unmasked full-width vst.
        # The wrapper transposes are layout plumbing around the mem-bound kernel.
        xt = jnp.transpose(x, (1, 0, 2))                          # (B, S, D)
        useful_row = 2 * D * itemsize
        padded_row = 3 * d_pad * itemsize                         # x + out + pe per seq row
        block_s = _choose_block_s(S, padded_row, useful_row,
                                  vmem_budget_bytes=vmem_budget_bytes,
                                  min_tile_bytes=min_tile_bytes,
                                  multiple_of=8)                   # (8,128) on minor dims
        n_seq = S // block_s
        grid = (n_seq, B)           # batch innermost: pe tile reused, not re-fetched
        footprint = 2 * block_s * 3 * d_pad * itemsize
        kernel = _pe_add_kernel_dense
        in_specs = [
            pl.BlockSpec((pl.Squeezed(), block_s, D), lambda i, b: (b, i, 0)),
            pl.BlockSpec((block_s, D), lambda i, b: (i, 0)),
        ]
        out_specs = pl.BlockSpec((pl.Squeezed(), block_s, D), lambda i, b: (b, i, 0))
        call_args = (xt, pe)
        out_shape = jax.ShapeDtypeStruct((B, S, D), x.dtype)
        post = lambda y: jnp.transpose(y, (1, 0, 2))

    # Explicit scoped-VMEM limit: at least the 16 MiB v5e default, enough for the
    # double-buffered tiles + headroom, well below v7x's 64 MiB per-TC physical.
    vmem_limit = int(min(48 << 20, max(footprint + (4 << 20), 16 << 20)))

    extra = {"input_output_aliases": {0: 0}} if donate_x else {}
    y = pl.pallas_call(
        kernel,
        out_shape=out_shape,
        grid=grid,
        in_specs=in_specs,
        out_specs=out_specs,
        compiler_params=pltpu.CompilerParams(
            dimension_semantics=("parallel", "parallel"),
            vmem_limit_bytes=vmem_limit),
        **extra,
    )(*call_args)
    return post(y)


if __name__ == "__main__":
    key = jax.random.PRNGKey(0)

    # Case 1: the module's small shape (seq, batch, d_model) = (8, 2, 32)
    # -> small-batch / narrow-D relayout path.
    S, B, D = 8, 2, 32
    MAX_LEN = 64
    x = jax.random.normal(key, (S, B, D), dtype=jnp.float32)
    pe = build_positional_encoding(D, max_len=MAX_LEN, dtype=x.dtype)
    out = jax.block_until_ready(positional_encoding_forward(x, pe))
    ref = x + pe[:S][:, None, :]
    assert out.shape == (S, B, D)
    assert jnp.allclose(out, ref, atol=1e-6, rtol=1e-6)

    # Case 2: a sublane/lane-dense shape -> direct (S, B, D) path.
    S2, B2, D2 = 16, 8, 128
    x2 = jax.random.normal(jax.random.fold_in(key, 1), (S2, B2, D2), dtype=jnp.float32)
    pe2 = build_positional_encoding(D2, max_len=32, dtype=x2.dtype)
    out2 = jax.block_until_ready(positional_encoding_forward(x2, pe2))
    ref2 = x2 + pe2[:S2][:, None, :]
    assert out2.shape == (S2, B2, D2)
    assert jnp.allclose(out2, ref2, atol=1e-6, rtol=1e-6)

    print("KERNEL_OK")
</pallas_src>

<mosaic_0001>
module attributes {stable_mosaic.version = 11 : i64} {
  func.func @_pe_add_kernel_dense(%arg0: i32, %arg1: i32, %arg2: memref<1x8x32xf32, #tpu.memory_space<vmem>>, %arg3: memref<8x32xf32, #tpu.memory_space<vmem>>, %arg4: memref<1x8x32xf32, #tpu.memory_space<vmem>>) attributes {dimension_semantics = [#tpu.dimension_semantics<parallel>, #tpu.dimension_semantics<parallel>], iteration_bounds = array<i64: 1, 2>, scalar_prefetch = 0 : i64, scratch_operands = 0 : i64, tpu.core_type = #tpu.core_type<tc>, window_params = [{transform_indices = @transform_0, window_bounds = array<i64: 1, 8, 32>}, {transform_indices = @transform_1, window_bounds = array<i64: 8, 32>}, {transform_indices = @transform_2, window_bounds = array<i64: 1, 8, 32>}]} {
    %c0 = arith.constant 0 : index
    %c0_0 = arith.constant 0 : index
    %c0_1 = arith.constant 0 : index
    %0 = vector.load %arg2[%c0, %c0_0, %c0_1] : memref<1x8x32xf32, #tpu.memory_space<vmem>>, vector<1x8x32xf32>
    %1 = vector.shape_cast %0 : vector<1x8x32xf32> to vector<8x32xf32>
    %c0_2 = arith.constant 0 : index
    %c0_3 = arith.constant 0 : index
    %2 = vector.load %arg3[%c0_2, %c0_3] : memref<8x32xf32, #tpu.memory_space<vmem>>, vector<8x32xf32>
    %3 = arith.addf %1, %2 : vector<8x32xf32>
    %c0_4 = arith.constant 0 : index
    %c0_5 = arith.constant 0 : index
    %c0_6 = arith.constant 0 : index
    %4 = vector.load %arg4[%c0_4, %c0_5, %c0_6] : memref<1x8x32xf32, #tpu.memory_space<vmem>>, vector<1x8x32xf32>
    %5 = vector.shape_cast %4 : vector<1x8x32xf32> to vector<8x32xf32>
    %6 = vector.shape_cast %3 : vector<8x32xf32> to vector<1x8x32xf32>
    tpu.vector_store %arg4[%c0_4, %c0_5, %c0_6], %6 {strides = array<i32>} : memref<1x8x32xf32, #tpu.memory_space<vmem>>, vector<1x8x32xf32>,
    return
  }
  func.func @transform_0(%arg0: i32, %arg1: i32) -> (i32, i32, i32) {
    %c0_i32 = arith.constant 0 : i32
    %c0_i32_0 = arith.constant 0 : i32
    return %arg1, %arg0, %c0_i32 : i32, i32, i32
  }
  func.func @transform_1(%arg0: i32, %arg1: i32) -> (i32, i32) {
    %c0_i32 = arith.constant 0 : i32
    %c0_i32_0 = arith.constant 0 : i32
    return %arg0, %c0_i32 : i32, i32
  }
  func.func @transform_2(%arg0: i32, %arg1: i32) -> (i32, i32, i32) {
    %c0_i32 = arith.constant 0 : i32
    %c0_i32_0 = arith.constant 0 : i32
    return %arg1, %arg0, %c0_i32 : i32, i32, i32
  }
}

</mosaic_0001>

<bundles_post_ra>
// kernel: tpu_custom_call.1
= control target key start
LH: loop header
LB: loop body
LE: loop exit
PB: predicated region body
PF: predicated region fallthrough
CT: control target
= control target key end

     0   :  { %7 = vsyncpa [#allocation3], 0  ;;  %s546_s0 = inlined_call_operand.vmem [shape: f32[2,8,32], index: 0, kind: input, shape index: {}]   ;;  %s547_s1 = inlined_call_operand.vmem [shape: f32[64,32], index: 1, kind: input, shape index: {}]   ;;  %s548_s2 = inlined_call_operand.hbm [shape: f32[2,8,32], index: 2, kind: output, shape index: {}]  }
   0x1   :  { %9 = vsyncpa [#allocation3 + $0x1], 0  ;;  %s451_s9 = smov 0   ;;  %s453_s10 = smov 0  }
   0x2   :  { %s455_s11 = smov 0   ;;  %s457_s12 = smov 0  }
   0x3   :  { %s459_s13 = smov 0   ;;  %s461_s14 = smov 0  }
   0x4 LB: > { %s289_s15 = sadd.s32 4294967295, %s434_s14   ;;  %s290_s16 = sadd.s32 4294967294, %s434_s14   ;;  %s434_s14 = sphi %s461_s14, %s15_s14   ;;  %s430_s13 = sphi %s459_s13, %s555_s13   ;;  %s426_s12 = sphi %s457_s12, %s554_s12   ;;  %s422_s11 = sphi %s455_s11, %s553_s11   ;;  %s418_s10 = sphi %s453_s10, %s552_s10   ;;  %s414_s9 = sphi %s451_s9, %s551_s9  }
   0x5   : > { %s24_s17 = sadd.s32 1, %s430_s13  ;;  %s90_s18 = sadd.s32 1, %s422_s11 }
   0x6   : > { %p25_p0 = scmp.ge.s32.totalorder %s24_s17, 2  ;;  %p100_p1 = scmp.ne.s32.totalorder %s422_s11, %s418_s10 }
   0x7   : > { %p101_p2 = scmp.eq.s32.totalorder %s289_s15, 1  ;;  %p106_p3 = scmp.ne.s32.totalorder %s418_s10, %s414_s9 }
   0x8   : > { %s557_s17 = smov (%p25_p0, %s24_s17), 0  ;;  %p107_p5 = scmp.eq.s32.totalorder %s290_s16, 1 }
   0x9   : > { %p489_p4 = por %p101_p2, %p100_p1  ;;  %s85_s20 = ssub.s32 %s430_s13, %s557_s17 }
   0xa   : > { %p294_p6 = scmp.ge.s32.totalorder %s434_s14, 1  ;;  %p88_p7 = scmp.eq.s32.totalorder %s85_s20, 0 }
   0xb   : > { %p496_p8 = por %p107_p5, %p106_p3  ;;  %p142_p9 = scmp.lt.s32.totalorder %s434_s14, 3 }
   0xc   : > { %s502_s22 = scalar_select %p88_p7, %s422_s11, %s90_s18  }
   0xd   : > { %p143_p10 = pnand %p294_p6, %p142_p9 }
   0xe   : > { %s167_s23 = sand.u32 (!%p143_p10), 1, %s418_s10   ;;  %p170_p11 = scmp.lt.s32.totalorder (!%p143_p10), %s426_s12, 1 }
   0xf   : > { %146 = sbr.rel (%p143_p10) target bundleno = 33 (0x21), region = 28  ;;  %s295_s24 = sshll.u32 (!%p143_p10), %s167_s23, 3 }
  0x10   : > { %s298_s25 = sshll.u32 (!%p143_p10), %s426_s12, 3  ;;  %s169_s4 = scalar_lea.vmem (!%p143_p10), [#allocation2], %s295_s24 }
  0x11   : > { %s198_s28 = scalar_lea.hbm (!%p143_p10), %s548_s2, %s298_s25  ;;  %s200_s5 = sshll.u32 (!%p143_p10), %s169_s4, 4  ;;  %s201_s5 = int_to_ptr.vmem [resolvable:$true] %s200_s5 }
  0x12   : > { %s202_s15 = sshll.u32 (!%p143_p10), %s198_s28, 4  ;;  %s187_s16 = scalar_lea.sflag (!%p143_p10), [#allocation3], %s167_s23  ;;  %s203_s15 = int_to_ptr.hbm [resolvable:$true] %s202_s15 }
  0x13   : > { %s376_s25 = scalar_lea.hbm (!%p143_p10), %s548_s2, 16 }
  0x14   : > { %s559_s12 = smov (!%p170_p11, %s426_s12), 1  ;;  %v182_v0 = vld [vmem:[%s547_s1] sm:$0xff]  ;;  %vm184_vm0 = vcmask 261120  }
  0x15   : > { %s296_s29 = sshll.u32 %s559_s12, 3  ;;  %s370_s12 = sshra.s32 %s203_s15, 4  ;;  %s371_s12 = int_to_ptr.hbm [resolvable:$true] %s370_s12 }
  0x16   : > { %s176_s8 = scalar_lea.vmem %s546_s0, %s296_s29  ;;  %s372_s18 = scalar_lea.hbm %s371_s12, 8 }
  0x17   : > { %v181_v1 = vld [vmem:[%s176_s8] sm:$0xff]  ;;  %p373_p12 = scmp.ne.s32.totalorder %s371_s12, %s372_s18  ;;  %p377_p1 = scmp.lt.s32.totalorder %s371_s12, %s548_s2 }
  0x18   : > { %v183_v2 = vadd.f32 %v182_v0, %v181_v1  ;;  %p378_p2 = scmp.lt.s32.totalorder %s376_s25, %s372_s18 }
  0x19   : > { %p374_p13 = pnand %p373_p12, %p489_p4 }
  0x1a   : > { %185 = vst.msk [vmem:[%s169_s4] sm:$0xff] %vm184_vm0, %v183_v2  ;;  %p379_p3 = por %p378_p2, %p377_p1 }
  0x1b   : > { %p375_p0 = pneg %p374_p13 }
  0x1d   : > { %p380_p5 = pnand %p379_p3, %p375_p0 }
  0x1f   : > { %383 = shalt.err (!%p380_p5)
}
  0x20   : > { %301 = dma.vmem_to_hbm [thread:$0]  (%p489_p4), %s201_s5, 128, %s203_s15, %s187_s16  }
  0x21 PF: > { %p307_p6 = scmp.ge.s32.totalorder %s434_s14, 2  ;;  %s214_s23 = sand.u32 1, %s414_s9  }
  0x22   : > { %s215_s28 = scalar_lea.sflag [#allocation3], %s214_s23 }
  0x23   : > { %p304_p7 = pnand %p307_p6, %p496_p8 }
  0x25   : > { %p305_p9 = pneg %p304_p7 }
  0x27   : > { %409 = dma.done.wait (%p305_p9), %s215_s28, 128  }
  0x28   : > { %411 = vsyncadd (%p305_p9), %s215_s28, 4294967168  ;;  %s15_s14 = sadd.s32 1, %s434_s14   ;;  %s551_s9 = smov %s418_s10 }
  0x29   : > { %p12_p10 = scmp.ge.s32.totalorder %s15_s14, 4   ;;  %s552_s10 = smov %s422_s11 }
  0x2a   : > { %s553_s11 = smov %s502_s22  ;;  %s554_s12 = smov %s430_s13 }
  0x2b   : > { %s555_s13 = smov %s557_s17  ;;  %14 = sbr.rel (!%p12_p10) target bundleno = 4 (0x4), region = 66 }
  0x30   :  { %221 = vsyncpa [#allocation3], 1 }
  0x31   :  { %223 = vsyncpa [#allocation3 + $0x1], 1 }

</bundles_post_ra>
